<compile_context>
chip_gen: v5e
topology: v5e:2x2
jax: 0.10.0
libtpu: 0.0.40
codegen_flags: <defaults>
</compile_context>

<pallas_src>
import functools

import jax
import jax.numpy as jnp
from jax.experimental import pallas as pl
from jax.experimental.pallas import tpu as pltpu

N_AGENTS = 4
EMBED_DIM = 32
STATE_DIM = 16


def _round_up(x, m):
    return (x + m - 1) // m * m


def qmixer_kernel(x_ref, w_ref, wv2_ref, bv2_ref, out_ref, *, n_agents,
                  embed_dim):
    A, E = n_agents, embed_dim
    AE = A * E
    q_off = AE + 3 * E          # row offset of the replicated-q block in h

    # Single fused hyper-network matmul (MXU, f32 accumulation).  Rows of h:
    #   [0, AE)            s @ W1 + b1h          (per-agent mixing weights)
    #   [AE, AE+E)         s @ Wb1 + bb1         (mixing bias b1)
    #   [AE+E, AE+2E)      s @ Wf + bwf          (final mixing weights)
    #   [AE+2E, AE+3E)     s @ Wv1 + bv1         (V hidden pre-activation)
    #   [q_off, q_off+AE)  q replicated per agent (exact, via the 0/1 G block)
    # All epilogue tensors below are (features, tile_n) -> fully lane-dense.
    h = jnp.dot(w_ref[...], x_ref[...], preferred_element_type=jnp.float32)

    w1 = jnp.abs(h[0:AE, :])                                  # (AE, Tn)
    b1 = h[AE:AE + E, :]                                      # (E,  Tn)
    w_final = jnp.abs(h[AE + E:AE + 2 * E, :])                # (E,  Tn)
    hv = jnp.maximum(h[AE + 2 * E:AE + 3 * E, :], 0.0)        # (E,  Tn)
    q_rep = h[q_off:q_off + AE, :]                            # (AE, Tn)

    # bmm(q, w1): elementwise product, then sublane-slice adds over agents.
    t = q_rep * w1
    qw = t[0:E, :]
    for a in range(1, A):
        qw = qw + t[a * E:(a + 1) * E, :]

    # ELU (alpha=1); exp guarded so the positive branch never overflows.
    pre = qw + b1
    hidden = jnp.where(pre > 0.0, pre, jnp.exp(jnp.minimum(pre, 0.0)) - 1.0)

    # Fold V[2]'s weight into the elementwise reduction.
    z = hidden * w_final + hv * wv2_ref[...]                  # (E, Tn)

    # Reduce the E feature rows: cheap halving tree, then one sublane sum.
    r = z
    while r.shape[0] > 8 and r.shape[0] % 16 == 0:
        half = r.shape[0] // 2
        r = r[:half, :] + r[half:, :]
    y = jnp.sum(r, axis=0, keepdims=True)                     # (1, Tn)

    out_ref[...] = (y + bv2_ref[0, 0]).astype(out_ref.dtype)


def init_params(key, n_agents, embed_dim, state_dim):
    """Deterministic PyTorch-Linear-style init (uniform +-1/sqrt(fan_in))."""
    def linear(k, fan_in, fan_out):
        kw, kb = jax.random.split(k)
        bound = 1.0 / jnp.sqrt(fan_in)
        # stored transposed: (in, out); bias as (1, out)
        w = jax.random.uniform(kw, (fan_in, fan_out), jnp.float32, -bound, bound)
        b = jax.random.uniform(kb, (1, fan_out), jnp.float32, -bound, bound)
        return w, b

    k1, k2, k3, k4, k5 = jax.random.split(key, 5)
    w1T, b1h = linear(k1, state_dim, embed_dim * n_agents)   # hyper_w_1
    wfT, bwf = linear(k2, state_dim, embed_dim)              # hyper_w_final
    wb1T, bb1 = linear(k3, state_dim, embed_dim)             # hyper_b_1
    wv1T, bv1 = linear(k4, state_dim, embed_dim)             # V[0]
    wv2T, bv2 = linear(k5, embed_dim, 1)                     # V[2]
    return dict(w1T=w1T, b1h=b1h, wb1T=wb1T, bb1=bb1, wfT=wfT, bwf=bwf,
                wv1T=wv1T, bv1=bv1, wv2T=wv2T, bv2=bv2)


@functools.partial(jax.jit, static_argnames=("tile_n", "matmul_dtype"))
def qmixer_forward(agent_qs, states, params, *, tile_n=4096,
                   matmul_dtype=jnp.bfloat16):
    B, T, A = agent_qs.shape
    S = states.shape[-1]
    E = params["wb1T"].shape[-1]
    assert E % 8 == 0, "embed_dim must be a multiple of 8 for clean slices"
    AE = A * E
    N = B * T

    q_off = AE + 3 * E               # 224 for (A=4, E=32)
    f_total = q_off + AE             # 352
    kp = _round_up(S + A + 1, 8)     # state cols + q cols + ones(bias) column

    # ---- chip-aware tile size / VMEM budget --------------------------------
    itemsize = jnp.dtype(matmul_dtype).itemsize
    # Rough live-VMEM bytes per tile row: f32 h + big (AE,Tn) slices +
    # E-wide temps + double-buffered transposed input columns.
    est_per_row = f_total * 4 + 3 * AE * 4 + 8 * E * 4 + 2 * kp * itemsize
    try:
        vmem_cap = int(pltpu.get_tpu_info().vmem_capacity_bytes)
    except Exception:                 # conservative fallback (v7x per-core)
        vmem_cap = 64 * 1024 * 1024
    vmem_budget = int(min(vmem_cap // 2, 96 * 1024 * 1024))

    if N >= 128:
        max_rows = max(128,
                       ((vmem_budget * 3 // 4) // est_per_row) // 128 * 128)
        tile_n = min(tile_n, _round_up(N, 128), max_rows)
        tile_n = _round_up(tile_n, 128)
    else:
        tile_n = N                    # single tiny tile, block == full array
    grid_n = -(-N // tile_n)
    n_pad = grid_n * tile_n

    # ---- one fused wrapper pass: concat + ones col + cast + transpose (+pad)
    cols = [states.reshape(N, S), agent_qs.reshape(N, A),
            jnp.ones((N, 1), states.dtype)]
    if kp > S + A + 1:
        cols.append(jnp.zeros((N, kp - (S + A + 1)), states.dtype))
    x_t = jnp.concatenate(cols, axis=1).astype(matmul_dtype).T    # (kp, N)
    if n_pad != N:
        x_t = jnp.pad(x_t, ((0, 0), (0, n_pad - N)))              # zero tail

    # ---- fused feature-major weight block (tiny constant) ------------------
    #   columns 0:S    -> state weights for [w1 | b1 | w_final | V0]
    #   columns S:S+A  -> 0/1 q-replication matrix G (q_rep rows only)
    #   column  S+A    -> fused hyper biases (multiplied by the ones column)
    w_state = jnp.concatenate([params["w1T"], params["wb1T"],
                               params["wfT"], params["wv1T"]], axis=1)
    b_state = jnp.concatenate([params["b1h"], params["bb1"],
                               params["bwf"], params["bv1"]], axis=1)
    g_rep = jnp.repeat(jnp.eye(A, dtype=jnp.float32), E, axis=1)   # (A, AE)

    w_big = jnp.zeros((f_total, kp), jnp.float32)
    w_big = w_big.at[:q_off, :S].set(w_state.T)
    w_big = w_big.at[:q_off, S + A].set(b_state[0])
    w_big = w_big.at[q_off:, S:S + A].set(g_rep.T)
    w_big = w_big.astype(matmul_dtype)

    wv2_col = params["wv2T"].reshape(E, 1).astype(jnp.float32)     # V[2] weight
    bv2 = params["bv2"].reshape(1, 1).astype(jnp.float32)          # V[2] bias

    out = pl.pallas_call(
        functools.partial(qmixer_kernel, n_agents=A, embed_dim=E),
        out_shape=jax.ShapeDtypeStruct((1, n_pad), jnp.float32),
        grid=(grid_n,),
        in_specs=[
            pl.BlockSpec((kp, tile_n), lambda i: (0, i)),          # x_T tile
            pl.BlockSpec((f_total, kp), lambda i: (0, 0)),         # fused W
            pl.BlockSpec((E, 1), lambda i: (0, 0)),                # V[2] weight
            pl.BlockSpec(memory_space=pltpu.MemorySpace.SMEM),     # V[2] bias
        ],
        out_specs=pl.BlockSpec((1, tile_n), lambda i: (0, i)),     # lane-dense
        compiler_params=pltpu.CompilerParams(
            dimension_semantics=("parallel",),
            vmem_limit_bytes=vmem_budget,
        ),
    )(x_t, w_big, wv2_col, bv2)

    return out[0, :N].reshape(B, T, 1)


def qmixer_reference(agent_qs, states, params, matmul_dtype=jnp.float32):
    """Pure-JAX reference mirroring the PyTorch forward.  With
    matmul_dtype=bf16 it applies the same input/weight/bias rounding as the
    kernel's fast path (V[2] stays f32, exactly as in the kernel)."""
    B, T, A = agent_qs.shape
    S = states.shape[-1]
    E = params["wb1T"].shape[-1]
    hp = jax.lax.Precision.HIGHEST
    md = matmul_dtype

    def hyper(x, w, b):
        y = jnp.dot(x.astype(md), w.astype(md),
                    preferred_element_type=jnp.float32, precision=hp)
        return y + b.astype(md).astype(jnp.float32)

    s = states.reshape(-1, S)
    q = agent_qs.reshape(-1, 1, A).astype(md).astype(jnp.float32)

    w1 = jnp.abs(hyper(s, params["w1T"], params["b1h"])).reshape(-1, A, E)
    b1 = hyper(s, params["wb1T"], params["bb1"]).reshape(-1, 1, E)
    pre = jnp.einsum("bia,bae->bie", q, w1, precision=hp) + b1
    hidden = jnp.where(pre > 0, pre, jnp.exp(jnp.minimum(pre, 0.0)) - 1.0)
    w_final = jnp.abs(hyper(s, params["wfT"], params["bwf"])).reshape(-1, E, 1)
    hv = jnp.maximum(hyper(s, params["wv1T"], params["bv1"]), 0.0)
    v = (jnp.dot(hv, params["wv2T"], precision=hp)
         + params["bv2"]).reshape(-1, 1, 1)
    y = jnp.einsum("bie,bej->bij", hidden, w_final, precision=hp) + v
    return y.reshape(B, T, 1)


if __name__ == "__main__":
    key = jax.random.PRNGKey(0)
    kparam, kq, ks, kq2, ks2 = jax.random.split(key, 5)

    params = init_params(kparam, N_AGENTS, EMBED_DIM, STATE_DIM)

    # Small shapes (single tiny tile).
    B, T = 2, 8
    agent_qs = jax.random.normal(kq, (B, T, N_AGENTS), jnp.float32)
    states = jax.random.normal(ks, (B, T, STATE_DIM), jnp.float32)

    # f32 matmul path: matches the f32 (PyTorch-parity) reference tightly.
    out_f32 = jax.block_until_ready(
        qmixer_forward(agent_qs, states, params, matmul_dtype=jnp.float32))
    ref_f32 = qmixer_reference(agent_qs, states, params, jnp.float32)
    assert out_f32.shape == (B, T, 1)
    assert jnp.allclose(out_f32, ref_f32, atol=5e-4, rtol=5e-4), \
        float(jnp.max(jnp.abs(out_f32 - ref_f32)))

    # Default bf16 fast path: matches a reference with identical bf16 rounding
    # of the matmul inputs/weights/biases (documented API tradeoff).
    out_bf16 = jax.block_until_ready(qmixer_forward(agent_qs, states, params))
    ref_bf16 = qmixer_reference(agent_qs, states, params, jnp.bfloat16)
    assert out_bf16.shape == (B, T, 1)
    assert jnp.allclose(out_bf16, ref_bf16, atol=2e-3, rtol=2e-3), \
        float(jnp.max(jnp.abs(out_bf16 - ref_bf16)))

    # Multi-tile grid + ragged tail (N=400 not a multiple of tile_n=128).
    B2, T2 = 4, 100
    agent_qs2 = jax.random.normal(kq2, (B2, T2, N_AGENTS), jnp.float32)
    states2 = jax.random.normal(ks2, (B2, T2, STATE_DIM), jnp.float32)
    out2 = jax.block_until_ready(
        qmixer_forward(agent_qs2, states2, params, tile_n=128))
    ref2 = qmixer_reference(agent_qs2, states2, params, jnp.bfloat16)
    assert out2.shape == (B2, T2, 1)
    assert jnp.allclose(out2, ref2, atol=2e-3, rtol=2e-3), \
        float(jnp.max(jnp.abs(out2 - ref2)))

    print("KERNEL_OK")
</pallas_src>

<mosaic_0001>
module attributes {stable_mosaic.version = 11 : i64} {
  func.func @qmixer_kernel(%arg0: i32, %arg1: memref<24x16xf32, #tpu.memory_space<vmem>>, %arg2: memref<352x24xf32, #tpu.memory_space<vmem>>, %arg3: memref<32x1xf32, #tpu.memory_space<vmem>>, %arg4: memref<1x1xf32, #tpu.memory_space<smem>>, %arg5: memref<1x16xf32, #tpu.memory_space<vmem>>) attributes {dimension_semantics = [#tpu.dimension_semantics<parallel>], iteration_bounds = array<i64: 1>, scalar_prefetch = 0 : i64, scratch_operands = 0 : i64, tpu.core_type = #tpu.core_type<tc>, window_params = [{transform_indices = @transform_0, window_bounds = array<i64: 24, 16>}, {pipeline_mode = #tpu.pipeline_mode<synchronous>, transform_indices = @transform_1, window_bounds = array<i64: 352, 24>}, {pipeline_mode = #tpu.pipeline_mode<synchronous>, transform_indices = @transform_2, window_bounds = array<i64: 32, 1>}, {transform_indices = @transform_3, window_bounds = array<i64: 1, 1>}, {transform_indices = @transform_4, window_bounds = array<i64: 1, 16>}]} {
    %c0 = arith.constant 0 : index
    %c0_0 = arith.constant 0 : index
    %0 = vector.load %arg2[%c0, %c0_0] : memref<352x24xf32, #tpu.memory_space<vmem>>, vector<352x24xf32>
    %c0_1 = arith.constant 0 : index
    %c0_2 = arith.constant 0 : index
    %1 = vector.load %arg1[%c0_1, %c0_2] : memref<24x16xf32, #tpu.memory_space<vmem>>, vector<24x16xf32>
    %cst = arith.constant dense<0.000000e+00> : vector<352x16xf32>
    %2 = tpu.matmul %0, %1, %cst {dimension_numbers = #tpu.dot_dimension_numbers<[1], [0], [0], [1], [0, 0, 1, 1], [], []>} : vector<352x24xf32>, vector<24x16xf32>, vector<352x16xf32> -> vector<352x16xf32>
    %3 = vector.extract_strided_slice %2 {offsets = [0, 0], sizes = [128, 16], strides = [1, 1]} : vector<352x16xf32> to vector<128x16xf32>
    %4 = math.absf %3 : vector<128x16xf32>
    %5 = vector.extract_strided_slice %2 {offsets = [128, 0], sizes = [32, 16], strides = [1, 1]} : vector<352x16xf32> to vector<32x16xf32>
    %6 = vector.extract_strided_slice %2 {offsets = [160, 0], sizes = [32, 16], strides = [1, 1]} : vector<352x16xf32> to vector<32x16xf32>
    %7 = math.absf %6 : vector<32x16xf32>
    %8 = vector.extract_strided_slice %2 {offsets = [192, 0], sizes = [32, 16], strides = [1, 1]} : vector<352x16xf32> to vector<32x16xf32>
    %cst_3 = arith.constant 0.000000e+00 : f32
    %9 = vector.broadcast %cst_3 : f32 to vector<32x16xf32>
    %10 = arith.maximumf %8, %9 : vector<32x16xf32>
    %11 = vector.extract_strided_slice %2 {offsets = [224, 0], sizes = [128, 16], strides = [1, 1]} : vector<352x16xf32> to vector<128x16xf32>
    %12 = arith.mulf %11, %4 : vector<128x16xf32>
    %13 = vector.extract_strided_slice %12 {offsets = [0, 0], sizes = [32, 16], strides = [1, 1]} : vector<128x16xf32> to vector<32x16xf32>
    %14 = vector.extract_strided_slice %12 {offsets = [32, 0], sizes = [32, 16], strides = [1, 1]} : vector<128x16xf32> to vector<32x16xf32>
    %15 = arith.addf %13, %14 : vector<32x16xf32>
    %16 = vector.extract_strided_slice %12 {offsets = [64, 0], sizes = [32, 16], strides = [1, 1]} : vector<128x16xf32> to vector<32x16xf32>
    %17 = arith.addf %15, %16 : vector<32x16xf32>
    %18 = vector.extract_strided_slice %12 {offsets = [96, 0], sizes = [32, 16], strides = [1, 1]} : vector<128x16xf32> to vector<32x16xf32>
    %19 = arith.addf %17, %18 : vector<32x16xf32>
    %20 = arith.addf %19, %5 : vector<32x16xf32>
    %cst_4 = arith.constant 0.000000e+00 : f32
    %21 = vector.broadcast %cst_4 : f32 to vector<32x16xf32>
    %22 = arith.cmpf ogt, %20, %21 : vector<32x16xf32>
    %cst_5 = arith.constant 0.000000e+00 : f32
    %23 = vector.broadcast %cst_5 : f32 to vector<32x16xf32>
    %24 = arith.minimumf %20, %23 : vector<32x16xf32>
    %25 = math.exp %24 : vector<32x16xf32>
    %cst_6 = arith.constant 1.000000e+00 : f32
    %26 = vector.broadcast %cst_6 : f32 to vector<32x16xf32>
    %27 = arith.subf %25, %26 : vector<32x16xf32>
    %28 = arith.select %22, %20, %27 : vector<32x16xi1>, vector<32x16xf32>
    %29 = arith.mulf %28, %7 : vector<32x16xf32>
    %c0_7 = arith.constant 0 : index
    %c0_8 = arith.constant 0 : index
    %30 = vector.load %arg3[%c0_7, %c0_8] : memref<32x1xf32, #tpu.memory_space<vmem>>, vector<32x1xf32>
    %31 = vector.broadcast %30 : vector<32x1xf32> to vector<32x16xf32>
    %32 = arith.mulf %10, %31 : vector<32x16xf32>
    %33 = arith.addf %29, %32 : vector<32x16xf32>
    %34 = vector.extract_strided_slice %33 {offsets = [0, 0], sizes = [16, 16], strides = [1, 1]} : vector<32x16xf32> to vector<16x16xf32>
    %35 = vector.extract_strided_slice %33 {offsets = [16, 0], sizes = [16, 16], strides = [1, 1]} : vector<32x16xf32> to vector<16x16xf32>
    %36 = arith.addf %34, %35 : vector<16x16xf32>
    %37 = vector.extract_strided_slice %36 {offsets = [0, 0], sizes = [8, 16], strides = [1, 1]} : vector<16x16xf32> to vector<8x16xf32>
    %38 = vector.extract_strided_slice %36 {offsets = [8, 0], sizes = [8, 16], strides = [1, 1]} : vector<16x16xf32> to vector<8x16xf32>
    %39 = arith.addf %37, %38 : vector<8x16xf32>
    %cst_9 = arith.constant dense<0.000000e+00> : vector<16xf32>
    %40 = vector.multi_reduction <add>, %39, %cst_9 [0] : vector<8x16xf32> to vector<16xf32>
    %41 = vector.shape_cast %40 : vector<16xf32> to vector<1x16xf32>
    %c0_10 = arith.constant 0 : index
    %c0_11 = arith.constant 0 : index
    %42 = memref.load %arg4[%c0_10, %c0_11] : memref<1x1xf32, #tpu.memory_space<smem>>
    %43 = vector.broadcast %42 : f32 to vector<1x16xf32>
    %44 = arith.addf %41, %43 : vector<1x16xf32>
    %c0_12 = arith.constant 0 : index
    %c0_13 = arith.constant 0 : index
    %45 = vector.load %arg5[%c0_12, %c0_13] : memref<1x16xf32, #tpu.memory_space<vmem>>, vector<1x16xf32>
    tpu.vector_store %arg5[%c0_12, %c0_13], %44 {strides = array<i32>} : memref<1x16xf32, #tpu.memory_space<vmem>>, vector<1x16xf32>,
    return
  }
  func.func @transform_0(%arg0: i32) -> (i32, i32) {
    %c0_i32 = arith.constant 0 : i32
    %c0_i32_0 = arith.constant 0 : i32
    return %c0_i32, %arg0 : i32, i32
  }
  func.func @transform_1(%arg0: i32) -> (i32, i32) {
    %c0_i32 = arith.constant 0 : i32
    %c0_i32_0 = arith.constant 0 : i32
    %c0_i32_1 = arith.constant 0 : i32
    return %c0_i32, %c0_i32_0 : i32, i32
  }
  func.func @transform_2(%arg0: i32) -> (i32, i32) {
    %c0_i32 = arith.constant 0 : i32
    %c0_i32_0 = arith.constant 0 : i32
    %c0_i32_1 = arith.constant 0 : i32
    return %c0_i32, %c0_i32_0 : i32, i32
  }
  func.func @transform_3(%arg0: i32) -> (i32, i32) {
    %c0_i32 = arith.constant 0 : i32
    %c0_i32_0 = arith.constant 0 : i32
    %c0_i32_1 = arith.constant 0 : i32
    return %c0_i32, %c0_i32_0 : i32, i32
  }
  func.func @transform_4(%arg0: i32) -> (i32, i32) {
    %c0_i32 = arith.constant 0 : i32
    %c0_i32_0 = arith.constant 0 : i32
    return %c0_i32, %arg0 : i32, i32
  }
}

</mosaic_0001>

<bundles_post_ra>
// kernel: squeeze.3
= control target key start
LH: loop header
LB: loop body
LE: loop exit
PB: predicated region body
PF: predicated region fallthrough
CT: control target
= control target key end

     0   :  { %s80_s0 = inlined_call_operand.vmem [shape: f32[16], index: 0, kind: input, shape index: {}]   ;;  %s81_s1 = inlined_call_operand.hbm [shape: f32[2,8,1], index: 1, kind: output, shape index: {}]  }
   0x1   :  { %v5_v0 = vld [vmem:[%s80_s0] sm:$0x1] }
   0x2   :  { %2 = vsyncpa [#allocation1], 0  ;;  %6 = vst [vmem:[#allocation3] sm:$0x1] %v5_v0  ;;  %vm8_vm0 = vcmask 64512   ;;  %s62_s0 = smov 120  }
   0x3   :  { %s63_s8 = smov [#allocation0]   ;;  %s27_s1 = sshll.u32 %s81_s1, 4  ;;  %s28_s1 = int_to_ptr.hbm [resolvable:$true] %s27_s1 }
   0x4   :  { %s25_s9 = sshll.u32 %s63_s8, 4  ;;  %s26_s9 = int_to_ptr.vmem [resolvable:$true] %s25_s9 }
   0x9   :  { %v10_v1 = vld [vmem:[#allocation3] sm:$0x1]  }
   0xa   :  { %v7_v2 = vld [vmem:[#allocation3] sm:$0x1]   ;;  %11 = vrot.lane.b32.xlu0 %v10_v1, %s62_s0 }
   0xb   :  { %9 = vst.msk [vmem:[#allocation2] sm:$0x1] %vm8_vm0, %v7_v2  }
  0x7c   :  { %v12_v3 = vpop.permute.xlu0 %11  }
  0x7d   :  { %15 = vst.msk [vmem:[#allocation2 + $0x1] sm:$0x1] %vm8_vm0, %v12_v3  }
  0x84   :  { %v18_v4 = vld [vmem:[#allocation2] sm:$0x3] }
  0x85   :  { %21 = vst [vmem:[#allocation0] sm:$0x3] %v18_v4 }
  0x86   :  { %30 = dma.vmem_to_hbm [thread:$0]  %s26_s9, 32, %s28_s1, [#allocation1]  }
  0x87   :  { %60 = dma.done.wait [#allocation1], 32  }
  0x88   :  { %61 = vsyncadd [#allocation1], 4294967264 }
  0x89   :  { %33 = vsyncpa [#allocation1], 1 }

// kernel: qmixer_forward.1
= control target key start
LH: loop header
LB: loop body
LE: loop exit
PB: predicated region body
PF: predicated region fallthrough
CT: control target
= control target key end

     0   :  { %vm65_vm0 = vcmask 195584   ;;  %v551_v8 = vmov 0   ;;  %vm466_vm5 = vcmask 130048   ;;  %vm477_vm6 = vcmask 122880   ;;  %s825_s0 = inlined_call_operand.vmem [shape: f32[24,16], index: 0, kind: input, shape index: {}]   ;;  %s826_s1 = inlined_call_operand.vmem [shape: f32[352,24], index: 1, kind: input, shape index: {}]   ;;  %s827_s2 = inlined_call_operand.vmem [shape: f32[32,1], index: 2, kind: input, shape index: {}]   ;;  %s828_s3 = inlined_call_operand.<no memory space> [shape: f32[1,1], index: 3, kind: input, shape index: {}]   ;;  %s829_s4 = inlined_call_operand.vmem [shape: f32[1,16], index: 4, kind: output, shape index: {}]  }
   0x1   :  { %v64_v0 = vld [vmem:[%s825_s0 + $0x10] sm:$0xff]  ;;  %v63_v1 = vld [vmem:[%s825_s0 + $0x8] sm:$0xff]  ;;  %v62_v2 = vld [vmem:[%s825_s0] sm:$0xff]  ;;  %541 = vset.pattern.permute.xlu0 %v551_v8  ;;  %542 = vset.pattern.permute.xlu1 %v551_v8 }
   0x2   :  { %211 = vmatpush.msra.mxu0 %v64_v0  ;;  %532 = vmatpush.msra.mxu2 %v64_v0  ;;  %v18_v3 = vld [vmem:[%s826_s1] sm:$0xff]  ;;  %v40_v4 = vld [vmem:[%s826_s1 + $0xb0] sm:$0xff]  ;;  %v51_v5 = vld [vmem:[%s826_s1 + $0x108] sm:$0xff] }
   0x3   :  { %533 = vmatpush.msra.mxu3 %v64_v0  ;;  %531 = vmatpush.msra.mxu1 %v64_v0  ;;  %v29_v6 = vld [vmem:[%s826_s1 + $0x58] sm:$0xff]  ;;  %v431_v7 = vld [vmem:[%s827_s2] sm:$0xff]  ;;  %v19_v9 = vld [vmem:[%s826_s1 + $0x8] sm:$0xff] }
   0x4   :  { %212 = vmatpush.msra.mxu0 %v63_v1  ;;  %535 = vmatpush.msra.mxu2 %v63_v1  ;;  %v41_v10 = vld [vmem:[%s826_s1 + $0xb8] sm:$0xff]  ;;  %v52_v11 = vld [vmem:[%s826_s1 + $0x110] sm:$0xff]  ;;  %v30_v12 = vld [vmem:[%s826_s1 + $0x60] sm:$0xff] }
   0x5   :  { %536 = vmatpush.msra.mxu3 %v63_v1  ;;  %534 = vmatpush.msra.mxu1 %v63_v1  ;;  %v432_v13 = vld [vmem:[%s827_s2 + $0x8] sm:$0xff]  ;;  %v20_v14 = vld [vmem:[%s826_s1 + $0x10] sm:$0xff]  ;;  %v42_v15 = vld [vmem:[%s826_s1 + $0xc0] sm:$0xff] }
   0x6   :  { %213 = vmatpush.msra.mxu0 %v62_v2  ;;  %538 = vmatpush.msra.mxu2 %v62_v2  ;;  %v53_v16 = vld [vmem:[%s826_s1 + $0x118] sm:$0xff]  ;;  %v31_v17 = vld [vmem:[%s826_s1 + $0x68] sm:$0xff]  ;;  %v433_v18 = vld [vmem:[%s827_s2 + $0x10] sm:$0xff] }
   0x7   :  { %539 = vmatpush.msra.mxu3 %v62_v2  ;;  %483 = vmatmul.msk.f32.vlgmr.msra.gmra.mxu0 %vm65_vm0, %v18_v3  ;;  %v21_v19 = vld [vmem:[%s826_s1 + $0x18] sm:$0xff]  ;;  %v43_v20 = vld [vmem:[%s826_s1 + $0xc8] sm:$0xff]  ;;  %v54_v21 = vld [vmem:[%s826_s1 + $0x120] sm:$0xff] }
   0x8   :  { %505 = vmatmul.msk.f32.vlgmr.msra.gmra.mxu2 %vm65_vm0, %v40_v4  ;;  %516 = vmatmul.msk.f32.vlgmr.msra.gmra.mxu3 %vm65_vm0, %v51_v5  ;;  %v32_v22 = vld [vmem:[%s826_s1 + $0x70] sm:$0xff]  ;;  %v434_v23 = vld [vmem:[%s827_s2 + $0x18] sm:$0xff]  ;;  %v22_v24 = vld [vmem:[%s826_s1 + $0x20] sm:$0xff] }
   0x9   :  { %537 = vmatpush.msra.mxu1 %v62_v2  ;;  %437 = vperm.xlu0 %541, %v431_v7   ;;  %v44_v25 = vld [vmem:[%s826_s1 + $0xd0] sm:$0xff]  ;;  %v55_v26 = vld [vmem:[%s826_s1 + $0x128] sm:$0xff]  ;;  %v33_v27 = vld [vmem:[%s826_s1 + $0x78] sm:$0xff] }
   0xa   :  { %494 = vmatmul.msk.f32.vlgmr.msra.gmra.mxu1 %vm65_vm0, %v29_v6  ;;  %447 = vperm.xlu1 %542, %v433_v18   ;;  %v23_v28 = vld [vmem:[%s826_s1 + $0x28] sm:$0xff]  ;;  %v45_v29 = vld [vmem:[%s826_s1 + $0xd8] sm:$0xff]  ;;  %v56_v30 = vld [vmem:[%s826_s1 + $0x130] sm:$0xff] }
   0xb   :  { %v34_v31 = vld [vmem:[%s826_s1 + $0x80] sm:$0xff]  ;;  %v24_v32 = vld [vmem:[%s826_s1 + $0x30] sm:$0xff]  ;;  %v57_v34 = vld [vmem:[%s826_s1 + $0x138] sm:$0xff] }
   0xc   :  { %v46_v33 = vld [vmem:[%s826_s1 + $0xe0] sm:$0xff]  ;;  %v35_v35 = vld [vmem:[%s826_s1 + $0x88] sm:$0xff]  ;;  %v25_v36 = vld [vmem:[%s826_s1 + $0x38] sm:$0xff] }
   0xd   :  { %v47_v37 = vld [vmem:[%s826_s1 + $0xe8] sm:$0xff]  ;;  %v58_v38 = vld [vmem:[%s826_s1 + $0x140] sm:$0xff]  ;;  %v36_v39 = vld [vmem:[%s826_s1 + $0x90] sm:$0xff] }
   0xe   :  { %v26_v40 = vld [vmem:[%s826_s1 + $0x40] sm:$0xff]  ;;  %v48_v41 = vld [vmem:[%s826_s1 + $0xf0] sm:$0xff]  ;;  %v59_v42 = vld [vmem:[%s826_s1 + $0x148] sm:$0xff] }
   0xf   :  { %484 = vmatmul.msk.f32.gmra.mxu0 %vm65_vm0, %v19_v9  ;;  %v37_v43 = vld [vmem:[%s826_s1 + $0x98] sm:$0xff]  ;;  %v27_v44 = vld [vmem:[%s826_s1 + $0x48] sm:$0xff]  ;;  %v60_v46 = vld [vmem:[%s826_s1 + $0x150] sm:$0xff] }
  0x10   :  { %506 = vmatmul.msk.f32.gmra.mxu2 %vm65_vm0, %v41_v10  ;;  %517 = vmatmul.msk.f32.gmra.mxu3 %vm65_vm0, %v52_v11  ;;  %v49_v45 = vld [vmem:[%s826_s1 + $0xf8] sm:$0xff]  ;;  %v38_v47 = vld [vmem:[%s826_s1 + $0xa0] sm:$0xff]  ;;  %v28_v48 = vld [vmem:[%s826_s1 + $0x50] sm:$0xff] }
  0x11   :  { %442 = vperm.xlu0 %541, %v432_v13   ;;  %v50_v49 = vld [vmem:[%s826_s1 + $0x100] sm:$0xff]  ;;  %v61_v50 = vld [vmem:[%s826_s1 + $0x158] sm:$0xff]  ;;  %v39_v51 = vld [vmem:[%s826_s1 + $0xa8] sm:$0xff] }
  0x12   :  { %495 = vmatmul.msk.f32.gmra.mxu1 %vm65_vm0, %v30_v12  ;;  %452 = vperm.xlu1 %542, %v434_v23  }
  0x17   :  { %485 = vmatmul.msk.f32.gmra.mxu0 %vm65_vm0, %v20_v14 }
  0x18   :  { %507 = vmatmul.msk.f32.gmra.mxu2 %vm65_vm0, %v42_v15  ;;  %518 = vmatmul.msk.f32.gmra.mxu3 %vm65_vm0, %v53_v16 }
  0x1a   :  { %496 = vmatmul.msk.f32.gmra.mxu1 %vm65_vm0, %v31_v17 }
  0x1f   :  { %486 = vmatmul.msk.f32.gmra.mxu0 %vm65_vm0, %v21_v19 }
  0x20   :  { %508 = vmatmul.msk.f32.gmra.mxu2 %vm65_vm0, %v43_v20  ;;  %519 = vmatmul.msk.f32.gmra.mxu3 %vm65_vm0, %v54_v21 }
  0x22   :  { %497 = vmatmul.msk.f32.gmra.mxu1 %vm65_vm0, %v32_v22 }
  0x27   :  { %487 = vmatmul.msk.f32.gmra.mxu0 %vm65_vm0, %v22_v24 }
  0x28   :  { %509 = vmatmul.msk.f32.gmra.mxu2 %vm65_vm0, %v44_v25  ;;  %520 = vmatmul.msk.f32.gmra.mxu3 %vm65_vm0, %v55_v26 }
  0x2a   :  { %498 = vmatmul.msk.f32.gmra.mxu1 %vm65_vm0, %v33_v27 }
  0x2f   :  { %488 = vmatmul.msk.f32.gmra.mxu0 %vm65_vm0, %v23_v28 }
  0x30   :  { %510 = vmatmul.msk.f32.gmra.mxu2 %vm65_vm0, %v45_v29  ;;  %521 = vmatmul.msk.f32.gmra.mxu3 %vm65_vm0, %v56_v30 }
  0x32   :  { %499 = vmatmul.msk.f32.gmra.mxu1 %vm65_vm0, %v34_v31 }
  0x37   :  { %489 = vmatmul.msk.f32.gmra.mxu0 %vm65_vm0, %v24_v32 }
  0x38   :  { %511 = vmatmul.msk.f32.gmra.mxu2 %vm65_vm0, %v46_v33  ;;  %522 = vmatmul.msk.f32.gmra.mxu3 %vm65_vm0, %v57_v34 }
  0x3a   :  { %500 = vmatmul.msk.f32.gmra.mxu1 %vm65_vm0, %v35_v35 }
  0x3f   :  { %490 = vmatmul.msk.f32.gmra.mxu0 %vm65_vm0, %v25_v36 }
  0x40   :  { %512 = vmatmul.msk.f32.gmra.mxu2 %vm65_vm0, %v47_v37  ;;  %523 = vmatmul.msk.f32.gmra.mxu3 %vm65_vm0, %v58_v38 }
  0x42   :  { %501 = vmatmul.msk.f32.gmra.mxu1 %vm65_vm0, %v36_v39 }
  0x47   :  { %491 = vmatmul.msk.f32.gmra.mxu0 %vm65_vm0, %v26_v40 }
  0x48   :  { %513 = vmatmul.msk.f32.gmra.mxu2 %vm65_vm0, %v48_v41  ;;  %524 = vmatmul.msk.f32.gmra.mxu3 %vm65_vm0, %v59_v42 }
  0x4a   :  { %502 = vmatmul.msk.f32.gmra.mxu1 %vm65_vm0, %v37_v43 }
  0x4f   :  { %492 = vmatmul.msk.f32.gmra.mxu0 %vm65_vm0, %v27_v44 }
  0x50   :  { %514 = vmatmul.msk.f32.gmra.mxu2 %vm65_vm0, %v49_v45  ;;  %525 = vmatmul.msk.f32.gmra.mxu3 %vm65_vm0, %v60_v46 }
  0x52   :  { %503 = vmatmul.msk.f32.gmra.mxu1 %vm65_vm0, %v38_v47 }
  0x57   :  { %493 = vmatmul.msk.f32.gmra.mxu0 %vm65_vm0, %v28_v48 }
  0x58   :  { %515 = vmatmul.msk.f32.gmra.mxu2 %vm65_vm0, %v50_v49  ;;  %526 = vmatmul.msk.f32.gmra.mxu3 %vm65_vm0, %v61_v50 }
  0x5a   :  { %504 = vmatmul.msk.f32.gmra.mxu1 %vm65_vm0, %v39_v51 }
  0x84   :  { %v774_v52 = vpop.f32.mrf.mxu0 }
  0x87   :  { %v776_v53 = vpop.f32.mrf.mxu1 }
  0x8b   :  { %v778_v54 = vpop.f32.mrf.mxu2  ;;  %v314_v55 = vpop.f32.mrf.mxu3 }
  0x8c   :  { %v218_v56 = vpop.f32.mrf.mxu0 }
  0x8d   :  { %v348_v19 = vand.u32 2147483647, %v218_v56 }
  0x8f   :  { %v780_v57 = vpop.f32.mrf.mxu1 }
  0x93   :  { %v782_v58 = vpop.f32.mrf.mxu2  ;;  %v317_v59 = vpop.f32.mrf.mxu3 }
  0x94   :  { %v221_v60 = vpop.f32.mrf.mxu0 }
  0x95   :  { %v349_v33 = vand.u32 2147483647, %v221_v60  ;;  %v358_v60 = vand.u32 2147483647, %v776_v53 }
  0x97   :  { %v254_v61 = vpop.f32.mrf.mxu1 }
  0x98   :  { %v360_v31 = vand.u32 2147483647, %v254_v61  ;;  %v803_v61 = vpop.permute.xlu0 %437 }
  0x9b   :  { %v784_v62 = vpop.f32.mrf.mxu2  ;;  %v320_v63 = vpop.f32.mrf.mxu3 }
  0x9c   :  { %v224_v0 = vpop.f32.mrf.mxu0 }
  0x9d   :  { %v350_v37 = vand.u32 2147483647, %v224_v0 }
  0x9f   :  { %v257_v1 = vpop.f32.mrf.mxu1 }
  0xa0   :  { %v361_v50 = vand.u32 2147483647, %v257_v1 }
  0xa3   :  { %v786_v2 = vpop.f32.mrf.mxu2  ;;  %v788_v3 = vpop.f32.mrf.mxu3 }
  0xa4   :  { %v790_v4 = vpop.f32.mrf.mxu0 }
  0xa7   :  { %v792_v5 = vpop.f32.mrf.mxu1 }
  0xab   :  { %v794_v6 = vpop.f32.mrf.mxu2  ;;  %v326_v7 = vpop.f32.mrf.mxu3 }
  0xac   :  { %v230_v8 = vpop.f32.mrf.mxu0 }
  0xad   :  { %v352_v17 = vand.u32 2147483647, %v230_v8 }
  0xaf   :  { %v796_v9 = vpop.f32.mrf.mxu1  ;;  %v376_v22 = vmul.f32 %v352_v17, %v314_v55  ;;  %v351_v17 = vand.u32 2147483647, %v790_v4 }
  0xb3   :  { %v798_v10 = vpop.f32.mrf.mxu2  ;;  %v329_v11 = vpop.f32.mrf.mxu3 }
  0xb4   :  { %v233_v12 = vpop.f32.mrf.mxu0 }
  0xb5   :  { %v353_v34 = vand.u32 2147483647, %v233_v12 }
  0xb7   :  { %v266_v13 = vpop.f32.mrf.mxu1  ;;  %v377_v46 = vmul.f32 %v353_v34, %v317_v59  ;;  %v362_v59 = vand.u32 2147483647, %v792_v5  ;;  %v443_v34 = vpop.permute.xlu0 %442 }
  0xbb   :  { %v299_v14 = vpop.f32.mrf.mxu2  ;;  %v332_v15 = vpop.f32.mrf.mxu3 }
  0xbc   :  { %v236_v16 = vpop.f32.mrf.mxu0 }
  0xbd   :  { %v354_v38 = vand.u32 2147483647, %v236_v16 }
  0xbf   :  { %v269_v18 = vpop.f32.mrf.mxu1  ;;  %v378_v49 = vmul.f32 %v354_v38, %v320_v63 }
  0xc3   :  { %v302_v20 = vpop.f32.mrf.mxu2  ;;  %v335_v21 = vpop.f32.mrf.mxu3 }
  0xc4   :  { %v372_v23 = vmul.f32 %v348_v19, %v302_v20  ;;  %v239_v24 = vpop.f32.mrf.mxu0 }
  0xc5   :  { %v355_v63 = vand.u32 2147483647, %v239_v24 }
  0xc6   :  { %v388_v25 = vadd.f32 %v376_v22, %v372_v23 }
  0xc7   :  { %v272_v26 = vpop.f32.mrf.mxu1 }
  0xcb   :  { %v305_v27 = vpop.f32.mrf.mxu2  ;;  %v338_v28 = vpop.f32.mrf.mxu3 }
  0xcc   :  { %v242_v29 = vpop.f32.mrf.mxu0  ;;  %v384_v35 = vmul.f32 %v360_v31, %v338_v28  ;;  %v373_v39 = vmul.f32 %v349_v33, %v305_v27  ;;  %v379_v27 = vmul.f32 %v355_v63, %v788_v3 }
  0xcd   :  { %v356_v30 = vand.u32 2147483647, %v242_v29 }
  0xce   :  { %v389_v51 = vadd.f32 %v377_v46, %v373_v39 }
  0xcf   :  { %v380_v32 = vmul.f32 %v356_v30, %v326_v7  ;;  %v800_v45 = vpop.f32.mrf.mxu1  ;;  %v347_v7 = vand.u32 2147483647, %v774_v52  ;;  %v359_v52 = vand.u32 2147483647, %v780_v57 }
  0xd1   :  { %v392_v36 = vadd.f32 %v388_v25, %v380_v32  ;;  %v371_v20 = vmul.f32 %v347_v7, %v299_v14  ;;  %v383_v5 = vmul.f32 %v359_v52, %v335_v21  ;;  %v368_v32 = vmax.f32 %v786_v2, 0.0 }
  0xd3   :  { %v396_v40 = vadd.f32 %v392_v36, %v384_v35  ;;  %v308_v41 = vpop.f32.mrf.mxu2  ;;  %v341_v42 = vpop.f32.mrf.mxu3  ;;  %v456_v39 = vmul.f32 %v443_v34, %v368_v32 }
  0xd4   :  { %v374_v43 = vmul.f32 %v350_v37, %v308_v41  ;;  %v245_v44 = vpop.f32.mrf.mxu0  ;;  %v385_v8 = vmul.f32 %v361_v50, %v341_v42  ;;  %v448_v37 = vpop.permute.xlu1 %447  ;;  %v369_v42 = vmax.f32 %v794_v6, 0.0  ;;  %v367_v6 = vmax.f32 %v784_v62, 0.0 }
  0xd5   :  { %v357_v47 = vand.u32 2147483647, %v245_v44  ;;  %v400_v48 = vadd.f32 %v396_v40, %v266_v13  ;;  %v382_v13 = vmul.f32 %v358_v60, %v332_v15  ;;  %v365_v44 = vand.u32 2147483647, %v778_v54 }
  0xd6   :  { %v390_v0 = vadd.f32 %v378_v49, %v374_v43  ;;  %v457_v49 = vmul.f32 %v448_v37, %v369_v42 }
  0xd7   :  { %v381_v55 = vmul.f32 %v357_v47, %v329_v11  ;;  %v408_v56 = vmin.f32 %v400_v48, 0.0  ;;  %v278_v4 = vpop.f32.mrf.mxu1  ;;  %vm404_vm1 = vcmp.gt.f32.partialorder %v400_v48, 0.0  ;;  %v370_v47 = vmax.f32 %v798_v10, 0.0 }
  0xd8   :  { %v394_v23 = vadd.f32 %v390_v0, %v382_v13  ;;  %v364_v14 = vand.u32 2147483647, %v278_v4 }
  0xd9   :  { %v393_v12 = vadd.f32 %v389_v51, %v381_v55  ;;  %v413_v16 = vmul.f32 1.442695, %v408_v56  ;;  %v366_v55 = vand.u32 2147483647, %v782_v58 }
  0xdb   :  { %v397_v1 = vadd.f32 %v393_v12, %v385_v8  ;;  %v311_v19 = vpop.f32.mrf.mxu2  ;;  %v344_v11 = vpop.f32.mrf.mxu3  ;;  %543 = vpow2.f32 %v413_v16  ;;  %v363_v12 = vand.u32 2147483647, %v800_v45  ;;  %v475_v45 = vstv %s828_s3 }
  0xdc   :  { %v375_v53 = vmul.f32 %v351_v17, %v311_v19  ;;  %v386_v22 = vmul.f32 %v362_v59, %v344_v11  ;;  %v455_v17 = vmul.f32 %v803_v61, %v367_v6 }
  0xdd   :  { %v401_v25 = vadd.f32 %v397_v1, %v269_v18 }
  0xde   :  { %v387_v28 = vadd.f32 %v375_v53, %v371_v20  ;;  %v398_v29 = vadd.f32 %v394_v23, %v386_v22 }
  0xdf   :  { %v409_v30 = vmin.f32 %v401_v25, 0.0  ;;  %vm405_vm2 = vcmp.gt.f32.partialorder %v401_v25, 0.0 }
  0xe0   :  { %v391_v15 = vadd.f32 %v387_v28, %v379_v27  ;;  %v402_v24 = vadd.f32 %v398_v29, %v272_v26 }
  0xe1   :  { %v544_v31 = vpop.eup %543  ;;  %v415_v33 = vmul.f32 1.442695, %v409_v30 }
  0xe2   :  { %v395_v35 = vadd.f32 %v391_v15, %v383_v5  ;;  %v410_v36 = vmin.f32 %v402_v24, 0.0  ;;  %v528_v18 = vadd.f32 -1.0, %v544_v31  ;;  %vm406_vm3 = vcmp.gt.f32.partialorder %v402_v24, 0.0 }
  0xe3   :  { %545 = vpow2.f32 %v415_v33 }
  0xe4   :  { %v399_v57 = vadd.f32 %v395_v35, %v796_v9  ;;  %v417_v3 = vmul.f32 1.442695, %v410_v36  ;;  %v424_v38 = vsel %vm404_vm1, %v400_v48, %v528_v18  ;;  %v453_v48 = vpop.permute.xlu1 %452 }
  0xe5   :  { %v428_v21 = vmul.f32 %v424_v38, %v364_v14  ;;  %v458_v7 = vmul.f32 %v453_v48, %v370_v47 }
  0xe6   :  { %v407_v40 = vmin.f32 %v399_v57, 0.0  ;;  %547 = vpow2.f32 %v417_v3  ;;  %vm403_vm4 = vcmp.gt.f32.partialorder %v399_v57, 0.0 }
  0xe7   :  { %v460_v26 = vadd.f32 %v456_v39, %v428_v21 }
  0xe8   :  { %v411_v41 = vmul.f32 1.442695, %v407_v40 }
  0xe9   :  { %v546_v2 = vpop.eup %545 }
  0xea   :  { %v529_v43 = vadd.f32 -1.0, %v546_v2  ;;  %549 = vpow2.f32 %v411_v41 }
  0xec   :  { %v548_v46 = vpop.eup %547  ;;  %v425_v9 = vsel %vm405_vm2, %v401_v25, %v529_v43 }
  0xed   :  { %v429_v50 = vmul.f32 %v425_v9, %v365_v44  ;;  %v530_v51 = vadd.f32 -1.0, %v548_v46 }
  0xef   :  { %v426_v56 = vsel %vm406_vm3, %v402_v24, %v530_v51  ;;  %v461_v60 = vadd.f32 %v457_v49, %v429_v50 }
  0xf0   :  { %v550_v0 = vpop.eup %549  ;;  %v430_v8 = vmul.f32 %v426_v56, %v366_v55 }
  0xf1   :  { %v527_v54 = vadd.f32 -1.0, %v550_v0 }
  0xf2   :  { %v462_v10 = vadd.f32 %v458_v7, %v430_v8 }
  0xf3   :  { %v423_v16 = vsel %vm403_vm4, %v399_v57, %v527_v54 }
  0xf4   :  { %v427_v59 = vmul.f32 %v423_v16, %v363_v12  ;;  %v464_v13 = vadd.f32 %v462_v10, %v460_v26 }
  0xf6   :  { %v459_v63 = vadd.f32 %v455_v17, %v427_v59 }
  0xf8   :  { %v463_v58 = vadd.f32 %v461_v60, %v459_v63 }
  0xfa   :  { %v465_v1 = vadd.f32 %v464_v13, %v463_v58 }
  0xfc   :  { %v467_v19 = vsel %vm466_vm5, %v465_v1, 0.0 }
  0xfd   :  { %v468_v11 = vrot.slane %v467_v19, 4 }
  0xff   :  { %v469_v20 = vadd.f32 %v468_v11, %v467_v19 }
 0x101   :  { %v470_v62 = vrot.slane %v469_v20, 2 }
 0x103   :  { %v471_v53 = vadd.f32 %v470_v62, %v469_v20 }
 0x105   :  { %v472_v22 = vrot.slane %v471_v53, 1 }
 0x107   :  { %v473_v23 = vadd.f32 %v472_v22, %v471_v53 }
 0x109   :  { %v476_v25 = vadd.f32 %v475_v45, %v473_v23 }
 0x10b   :  { %478 = vst.msk [vmem:[%s829_s4] sm:$0x1] %vm477_vm6, %v476_v25 }

</bundles_post_ra>
